<compile_context>
chip_gen: v6e
topology: v6e:2x2x1
jax: 0.10.0
libtpu: 0.0.40
codegen_flags: <defaults>
</compile_context>

<pallas_src>
import functools

import jax
import jax.numpy as jnp
from jax.experimental import pallas as pl
from jax.experimental.pallas import tpu as pltpu


HIDDEN = 256
_MAX_BATCH_TILE = 2048   # per-grid-step rows at large batch (~18 MiB VMEM)
_TILE_ALIGN = 256        # batch tiles are multiples of this (>= 8 sublanes)


def _device_kind() -> str:
    try:
        return jax.devices()[0].device_kind.lower()
    except Exception:
        return ""


def _tensorcores_per_chip() -> int:
    # v7x has 2 TensorCores per chip; v5e/v6e have 1. Heuristic only affects
    # tiling (never correctness).
    return 2 if "7" in _device_kind() else 1


def _vpu_has_bf16() -> bool:
    # v5e (and older) have no bf16 VALU; v6e/v7x do.
    kind = _device_kind()
    return not any(v in kind for v in ("v2", "v3", "v4", "v5"))


def _twin_critic_kernel(obs_ref, act_ref, w1_ref, w2_ref, w3_ref,
                        out0_ref, out1_ref, xcat_ref, *, relu_in_bf16):
    # obs_ref : (Bt, obs_dim)        f32
    # act_ref : (Bt, act_dim)        f32
    # w1_ref  : (2, d_in, H)         bf16   (rows: observations first, then actions)
    # w2_ref  : (2, H, H)            bf16
    # w3_ref  : (2, 1, H)            bf16   (PyTorch (out=1, in=H) layout, lane-dense)
    # out*_ref: (Bt, 1)              f32
    # xcat_ref: (Bt, d_in)           f32 scratch (concatenated [obs | act])
    obs_dim = obs_ref.shape[-1]

    # Assemble torch.cat((observations, actions), dim=1) once per grid step so
    # layer 1 is a single K=d_in matmul (halves MXU pushes vs. two tiny-K dots).
    xcat_ref[:, :obs_dim] = obs_ref[...]
    xcat_ref[:, obs_dim:] = act_ref[...]
    x = xcat_ref[...].astype(jnp.bfloat16)

    outs = (out0_ref, out1_ref)
    for c in range(2):  # unrolled: both critics inside one grid step
        h1 = jnp.dot(x, w1_ref[c], preferred_element_type=jnp.float32)
        if relu_in_bf16:
            # bf16 VPU path (v6e/v7x): ReLU on half the vregs; commutes with
            # the bf16 rounding so the result is bit-identical to the f32 path.
            h1b = jnp.maximum(h1.astype(jnp.bfloat16), jnp.bfloat16(0))
        else:
            # v5e: no bf16 VALU -> keep the ReLU in f32.
            h1b = jnp.maximum(h1, 0.0).astype(jnp.bfloat16)
        h2 = jnp.dot(h1b, w2_ref[c], preferred_element_type=jnp.float32)
        h2 = jnp.maximum(h2, 0.0)
        # Head: lane-dense VPU multiply + XLU reduce instead of an N=1 MXU matmul.
        w3 = w3_ref[c].astype(jnp.float32)                    # (1, H)
        outs[c][...] = jnp.sum(h2 * w3, axis=-1, keepdims=True)


def _pick_batch_tile(batch: int) -> int:
    tc = _tensorcores_per_chip()
    if batch <= _TILE_ALIGN or (tc == 1 and batch <= _MAX_BATCH_TILE):
        return batch  # single full-extent block (always BlockSpec-legal)
    want_tiles = max(tc, pl.cdiv(batch, _MAX_BATCH_TILE))
    tile = pl.cdiv(batch, want_tiles)
    tile = ((tile + _TILE_ALIGN - 1) // _TILE_ALIGN) * _TILE_ALIGN
    return min(tile, _MAX_BATCH_TILE)


def twin_critic_forward(observations, actions, params):
    """observations: (B, obs_dim), actions: (B, act_dim); returns (q0, q1), each (B, 1)."""
    obs = observations.astype(jnp.float32)
    act = actions.astype(jnp.float32)
    B, obs_dim = obs.shape
    _, act_dim = act.shape
    d_in = obs_dim + act_dim
    w1, w2, w3 = params["w1"], params["w2"], params["w3"]
    assert w1.shape == (2, d_in, HIDDEN)

    tile_b = _pick_batch_tile(B)
    num_tiles = pl.cdiv(B, tile_b)

    flops = 2 * 2 * B * (d_in * HIDDEN + HIDDEN * HIDDEN + HIDDEN)
    bytes_accessed = ((obs.size + act.size + 2 * B) * 4
                      + (w1.size + w2.size + w3.size) * w1.dtype.itemsize)

    kernel = functools.partial(_twin_critic_kernel, relu_in_bf16=_vpu_has_bf16())

    out0, out1 = pl.pallas_call(
        kernel,
        out_shape=(jax.ShapeDtypeStruct((B, 1), jnp.float32),
                   jax.ShapeDtypeStruct((B, 1), jnp.float32)),
        grid=(num_tiles,),
        in_specs=[
            pl.BlockSpec((tile_b, obs_dim), lambda i: (i, 0)),
            pl.BlockSpec((tile_b, act_dim), lambda i: (i, 0)),
            # Weights: constant index_map -> VMEM-resident across batch tiles.
            pl.BlockSpec((2, d_in, HIDDEN), lambda i: (0, 0, 0)),
            pl.BlockSpec((2, HIDDEN, HIDDEN), lambda i: (0, 0, 0)),
            pl.BlockSpec((2, 1, HIDDEN), lambda i: (0, 0, 0)),
        ],
        out_specs=(
            pl.BlockSpec((tile_b, 1), lambda i: (i, 0)),
            pl.BlockSpec((tile_b, 1), lambda i: (i, 0)),
        ),
        scratch_shapes=[pltpu.VMEM((tile_b, d_in), jnp.float32)],
        compiler_params=pltpu.CompilerParams(
            dimension_semantics=("parallel",),
            vmem_limit_bytes=40 * 1024 * 1024),
        cost_estimate=pl.CostEstimate(
            flops=flops, transcendentals=0, bytes_accessed=bytes_accessed),
    )(obs, act, w1, w2, w3)
    return out0, out1


def init_params(key, action_space_size, observation_state_size,
                dtype=jnp.bfloat16):
    """Both critics' weights, stacked on a leading axis of size 2.

    w1/w2 are stored transposed relative to PyTorch ((in, out), so the kernel
    computes x @ W). w1's input rows follow torch.cat((observations, actions))
    ordering: observation rows first, then action rows. w3 keeps PyTorch's
    (out=1, in=256) layout so it is lane-dense for the in-kernel head
    reduction. Init mimics nn.Linear default: uniform(+/- 1/sqrt(fan_in)).
    Weights are bf16 (MXU-native); accumulation is f32 in the kernel.
    """
    d_in = action_space_size + observation_state_size
    k1, k2, k3 = jax.random.split(key, 3)

    def u(k, shape, fan_in):
        bound = 1.0 / jnp.sqrt(jnp.float32(fan_in))
        return jax.random.uniform(k, shape, jnp.float32, -bound, bound).astype(dtype)

    return {
        "w1": u(k1, (2, d_in, HIDDEN), d_in),
        "w2": u(k2, (2, HIDDEN, HIDDEN), HIDDEN),
        "w3": u(k3, (2, 1, HIDDEN), HIDDEN),
    }


def _reference(observations, actions, params):
    """Pure-JAX reference mirroring the kernel's bf16-in / f32-accumulate math."""
    x = jnp.concatenate([observations.astype(jnp.float32),
                         actions.astype(jnp.float32)], axis=1).astype(jnp.bfloat16)
    outs = []
    for c in range(2):
        h1 = jnp.dot(x, params["w1"][c], preferred_element_type=jnp.float32)
        h1 = jnp.maximum(h1, 0.0)
        h2 = jnp.dot(h1.astype(jnp.bfloat16), params["w2"][c],
                     preferred_element_type=jnp.float32)
        h2 = jnp.maximum(h2, 0.0)
        q = jnp.sum(h2 * params["w3"][c].astype(jnp.float32),
                    axis=-1, keepdims=True)
        outs.append(q)
    return outs[0], outs[1]


if __name__ == "__main__":
    key = jax.random.PRNGKey(0)
    k_params, k_obs, k_act = jax.random.split(key, 3)

    batch = 8
    observation_state_size = 24
    action_space_size = 8

    params = init_params(k_params, action_space_size, observation_state_size)
    observations = jax.random.normal(
        k_obs, (batch, observation_state_size), jnp.float32)
    actions = jax.random.normal(
        k_act, (batch, action_space_size), jnp.float32)

    q0, q1 = twin_critic_forward(observations, actions, params)
    jax.block_until_ready((q0, q1))

    r0, r1 = _reference(observations, actions, params)
    assert q0.shape == (batch, 1) and q1.shape == (batch, 1)
    assert jnp.allclose(q0, r0, atol=2e-3, rtol=2e-3)
    assert jnp.allclose(q1, r1, atol=2e-3, rtol=2e-3)

    print("KERNEL_OK")
</pallas_src>

<mosaic_0001>
module attributes {stable_mosaic.version = 11 : i64} {
  func.func @_twin_critic_kernel(%arg0: i32, %arg1: memref<8x24xf32, #tpu.memory_space<vmem>>, %arg2: memref<8x8xf32, #tpu.memory_space<vmem>>, %arg3: memref<2x32x256xbf16, #tpu.memory_space<vmem>>, %arg4: memref<2x256x256xbf16, #tpu.memory_space<vmem>>, %arg5: memref<2x1x256xbf16, #tpu.memory_space<vmem>>, %arg6: memref<8x1xf32, #tpu.memory_space<vmem>>, %arg7: memref<8x1xf32, #tpu.memory_space<vmem>>, %arg8: memref<8x32xf32, #tpu.memory_space<vmem>>) attributes {dimension_semantics = [#tpu.dimension_semantics<parallel>], iteration_bounds = array<i64: 1>, scalar_prefetch = 0 : i64, scratch_operands = 1 : i64, tpu.core_type = #tpu.core_type<tc>, window_params = [{transform_indices = @transform_0, window_bounds = array<i64: 8, 24>}, {transform_indices = @transform_1, window_bounds = array<i64: 8, 8>}, {pipeline_mode = #tpu.pipeline_mode<synchronous>, transform_indices = @transform_2, window_bounds = array<i64: 2, 32, 256>}, {pipeline_mode = #tpu.pipeline_mode<synchronous>, transform_indices = @transform_3, window_bounds = array<i64: 2, 256, 256>}, {pipeline_mode = #tpu.pipeline_mode<synchronous>, transform_indices = @transform_4, window_bounds = array<i64: 2, 1, 256>}, {transform_indices = @transform_5, window_bounds = array<i64: 8, 1>}, {transform_indices = @transform_6, window_bounds = array<i64: 8, 1>}]} {
    %c0 = arith.constant 0 : index
    %c0_0 = arith.constant 0 : index
    %0 = vector.load %arg1[%c0, %c0_0] : memref<8x24xf32, #tpu.memory_space<vmem>>, vector<8x24xf32>
    %c0_1 = arith.constant 0 : index
    %c0_2 = arith.constant 0 : index
    %1 = vector.load %arg8[%c0_1, %c0_2] : memref<8x32xf32, #tpu.memory_space<vmem>>, vector<8x24xf32>
    tpu.vector_store %arg8[%c0_1, %c0_2], %0 {strides = array<i32>} : memref<8x32xf32, #tpu.memory_space<vmem>>, vector<8x24xf32>,
    %c0_3 = arith.constant 0 : index
    %c0_4 = arith.constant 0 : index
    %2 = vector.load %arg2[%c0_3, %c0_4] : memref<8x8xf32, #tpu.memory_space<vmem>>, vector<8x8xf32>
    %c0_5 = arith.constant 0 : index
    %c24 = arith.constant 24 : index
    %3 = vector.load %arg8[%c0_5, %c24] : memref<8x32xf32, #tpu.memory_space<vmem>>, vector<8x8xf32>
    tpu.vector_store %arg8[%c0_5, %c24], %2 {strides = array<i32>} : memref<8x32xf32, #tpu.memory_space<vmem>>, vector<8x8xf32>,
    %c0_6 = arith.constant 0 : index
    %c0_7 = arith.constant 0 : index
    %4 = vector.load %arg8[%c0_6, %c0_7] : memref<8x32xf32, #tpu.memory_space<vmem>>, vector<8x32xf32>
    %5 = arith.truncf %4 : vector<8x32xf32> to vector<8x32xbf16>
    %c0_8 = arith.constant 0 : index
    %c0_9 = arith.constant 0 : index
    %c0_10 = arith.constant 0 : index
    %6 = vector.load %arg3[%c0_8, %c0_9, %c0_10] : memref<2x32x256xbf16, #tpu.memory_space<vmem>>, vector<1x32x256xbf16>
    %7 = vector.shape_cast %6 : vector<1x32x256xbf16> to vector<32x256xbf16>
    %cst = arith.constant dense<0.000000e+00> : vector<8x256xf32>
    %8 = tpu.matmul %5, %7, %cst {dimension_numbers = #tpu.dot_dimension_numbers<[1], [0], [0], [1], [0, 0, 1, 1], [], []>} : vector<8x32xbf16>, vector<32x256xbf16>, vector<8x256xf32> -> vector<8x256xf32>
    %9 = arith.truncf %8 : vector<8x256xf32> to vector<8x256xbf16>
    %cst_11 = arith.constant 0.000000e+00 : bf16
    %10 = vector.broadcast %cst_11 : bf16 to vector<8x256xbf16>
    %11 = arith.maximumf %9, %10 : vector<8x256xbf16>
    %c0_12 = arith.constant 0 : index
    %c0_13 = arith.constant 0 : index
    %c0_14 = arith.constant 0 : index
    %12 = vector.load %arg4[%c0_12, %c0_13, %c0_14] : memref<2x256x256xbf16, #tpu.memory_space<vmem>>, vector<1x256x256xbf16>
    %13 = vector.shape_cast %12 : vector<1x256x256xbf16> to vector<256x256xbf16>
    %cst_15 = arith.constant dense<0.000000e+00> : vector<8x256xf32>
    %14 = tpu.matmul %11, %13, %cst_15 {dimension_numbers = #tpu.dot_dimension_numbers<[1], [0], [0], [1], [0, 0, 1, 1], [], []>} : vector<8x256xbf16>, vector<256x256xbf16>, vector<8x256xf32> -> vector<8x256xf32>
    %cst_16 = arith.constant 0.000000e+00 : f32
    %15 = vector.broadcast %cst_16 : f32 to vector<8x256xf32>
    %16 = arith.maximumf %14, %15 : vector<8x256xf32>
    %c0_17 = arith.constant 0 : index
    %c0_18 = arith.constant 0 : index
    %c0_19 = arith.constant 0 : index
    %17 = vector.load %arg5[%c0_17, %c0_18, %c0_19] : memref<2x1x256xbf16, #tpu.memory_space<vmem>>, vector<1x1x256xbf16>
    %18 = vector.shape_cast %17 : vector<1x1x256xbf16> to vector<1x256xbf16>
    %19 = arith.extf %18 : vector<1x256xbf16> to vector<1x256xf32>
    %20 = vector.broadcast %19 : vector<1x256xf32> to vector<8x256xf32>
    %21 = arith.mulf %16, %20 : vector<8x256xf32>
    %cst_20 = arith.constant dense<0.000000e+00> : vector<8xf32>
    %22 = vector.multi_reduction <add>, %21, %cst_20 [1] : vector<8x256xf32> to vector<8xf32>
    %23 = vector.shape_cast %22 : vector<8xf32> to vector<8x1xf32>
    %c0_21 = arith.constant 0 : index
    %c0_22 = arith.constant 0 : index
    %24 = vector.load %arg6[%c0_21, %c0_22] : memref<8x1xf32, #tpu.memory_space<vmem>>, vector<8x1xf32>
    tpu.vector_store %arg6[%c0_21, %c0_22], %23 {strides = array<i32>} : memref<8x1xf32, #tpu.memory_space<vmem>>, vector<8x1xf32>,
    %c1 = arith.constant 1 : index
    %c0_23 = arith.constant 0 : index
    %c0_24 = arith.constant 0 : index
    %25 = vector.load %arg3[%c1, %c0_23, %c0_24] : memref<2x32x256xbf16, #tpu.memory_space<vmem>>, vector<1x32x256xbf16>
    %26 = vector.shape_cast %25 : vector<1x32x256xbf16> to vector<32x256xbf16>
    %cst_25 = arith.constant dense<0.000000e+00> : vector<8x256xf32>
    %27 = tpu.matmul %5, %26, %cst_25 {dimension_numbers = #tpu.dot_dimension_numbers<[1], [0], [0], [1], [0, 0, 1, 1], [], []>} : vector<8x32xbf16>, vector<32x256xbf16>, vector<8x256xf32> -> vector<8x256xf32>
    %28 = arith.truncf %27 : vector<8x256xf32> to vector<8x256xbf16>
    %cst_26 = arith.constant 0.000000e+00 : bf16
    %29 = vector.broadcast %cst_26 : bf16 to vector<8x256xbf16>
    %30 = arith.maximumf %28, %29 : vector<8x256xbf16>
    %c1_27 = arith.constant 1 : index
    %c0_28 = arith.constant 0 : index
    %c0_29 = arith.constant 0 : index
    %31 = vector.load %arg4[%c1_27, %c0_28, %c0_29] : memref<2x256x256xbf16, #tpu.memory_space<vmem>>, vector<1x256x256xbf16>
    %32 = vector.shape_cast %31 : vector<1x256x256xbf16> to vector<256x256xbf16>
    %cst_30 = arith.constant dense<0.000000e+00> : vector<8x256xf32>
    %33 = tpu.matmul %30, %32, %cst_30 {dimension_numbers = #tpu.dot_dimension_numbers<[1], [0], [0], [1], [0, 0, 1, 1], [], []>} : vector<8x256xbf16>, vector<256x256xbf16>, vector<8x256xf32> -> vector<8x256xf32>
    %cst_31 = arith.constant 0.000000e+00 : f32
    %34 = vector.broadcast %cst_31 : f32 to vector<8x256xf32>
    %35 = arith.maximumf %33, %34 : vector<8x256xf32>
    %c1_32 = arith.constant 1 : index
    %c0_33 = arith.constant 0 : index
    %c0_34 = arith.constant 0 : index
    %36 = vector.load %arg5[%c1_32, %c0_33, %c0_34] : memref<2x1x256xbf16, #tpu.memory_space<vmem>>, vector<1x1x256xbf16>
    %37 = vector.shape_cast %36 : vector<1x1x256xbf16> to vector<1x256xbf16>
    %38 = arith.extf %37 : vector<1x256xbf16> to vector<1x256xf32>
    %39 = vector.broadcast %38 : vector<1x256xf32> to vector<8x256xf32>
    %40 = arith.mulf %35, %39 : vector<8x256xf32>
    %cst_35 = arith.constant dense<0.000000e+00> : vector<8xf32>
    %41 = vector.multi_reduction <add>, %40, %cst_35 [1] : vector<8x256xf32> to vector<8xf32>
    %42 = vector.shape_cast %41 : vector<8xf32> to vector<8x1xf32>
    %c0_36 = arith.constant 0 : index
    %c0_37 = arith.constant 0 : index
    %43 = vector.load %arg7[%c0_36, %c0_37] : memref<8x1xf32, #tpu.memory_space<vmem>>, vector<8x1xf32>
    tpu.vector_store %arg7[%c0_36, %c0_37], %42 {strides = array<i32>} : memref<8x1xf32, #tpu.memory_space<vmem>>, vector<8x1xf32>,
    return
  }
  func.func @transform_0(%arg0: i32) -> (i32, i32) {
    %c0_i32 = arith.constant 0 : i32
    %c0_i32_0 = arith.constant 0 : i32
    return %arg0, %c0_i32 : i32, i32
  }
  func.func @transform_1(%arg0: i32) -> (i32, i32) {
    %c0_i32 = arith.constant 0 : i32
    %c0_i32_0 = arith.constant 0 : i32
    return %arg0, %c0_i32 : i32, i32
  }
  func.func @transform_2(%arg0: i32) -> (i32, i32, i32) {
    %c0_i32 = arith.constant 0 : i32
    %c0_i32_0 = arith.constant 0 : i32
    %c0_i32_1 = arith.constant 0 : i32
    %c0_i32_2 = arith.constant 0 : i32
    return %c0_i32, %c0_i32_0, %c0_i32_1 : i32, i32, i32
  }
  func.func @transform_3(%arg0: i32) -> (i32, i32, i32) {
    %c0_i32 = arith.constant 0 : i32
    %c0_i32_0 = arith.constant 0 : i32
    %c0_i32_1 = arith.constant 0 : i32
    %c0_i32_2 = arith.constant 0 : i32
    return %c0_i32, %c0_i32_0, %c0_i32_1 : i32, i32, i32
  }
  func.func @transform_4(%arg0: i32) -> (i32, i32, i32) {
    %c0_i32 = arith.constant 0 : i32
    %c0_i32_0 = arith.constant 0 : i32
    %c0_i32_1 = arith.constant 0 : i32
    %c0_i32_2 = arith.constant 0 : i32
    return %c0_i32, %c0_i32_0, %c0_i32_1 : i32, i32, i32
  }
  func.func @transform_5(%arg0: i32) -> (i32, i32) {
    %c0_i32 = arith.constant 0 : i32
    %c0_i32_0 = arith.constant 0 : i32
    return %arg0, %c0_i32 : i32, i32
  }
  func.func @transform_6(%arg0: i32) -> (i32, i32) {
    %c0_i32 = arith.constant 0 : i32
    %c0_i32_0 = arith.constant 0 : i32
    return %arg0, %c0_i32 : i32, i32
  }
}

</mosaic_0001>

<bundles_post_ra>
// kernel: tpu_custom_call.1
= control target key start
LH: loop header
LB: loop body
LE: loop exit
PB: predicated region body
PF: predicated region fallthrough
CT: control target
= control target key end

     0   :  { %12 = vsyncpa [#allocation4], 0  ;;  %s1117_s0 = inlined_call_operand.hbm [shape: f32[8,24], index: 0, kind: input, shape index: {}]   ;;  %s1118_s1 = inlined_call_operand.hbm [shape: f32[8,8], index: 1, kind: input, shape index: {}]   ;;  %s1119_s2 = inlined_call_operand.hbm [shape: bf16[2,32,256], index: 2, kind: input, shape index: {}]   ;;  %s1120_s3 = inlined_call_operand.hbm [shape: bf16[2,256,256], index: 3, kind: input, shape index: {}]   ;;  %s1121_s4 = inlined_call_operand.vmem [shape: bf16[2,1,256], index: 4, kind: input, shape index: {}]   ;;  %s1122_s5 = inlined_call_operand.vmem [shape: f32[8,1], index: 5, kind: output, shape index: {0}]   ;;  %s1123_s6 = inlined_call_operand.vmem [shape: f32[8,1], index: 6, kind: output, shape index: {1}]  }
   0x1   :  { %13 = vsyncpa [#allocation6], 0 }
   0x2   :  { %14 = vsyncpa [#allocation9], 0  ;;  %s1044_s21 = smov [#allocation5]   ;;  %s1045_s23 = smov [#allocation3]  }
   0x3   :  { %s31_s22 = sshll.u32 %s1044_s21, 4  ;;  %s21_s24 = sshll.u32 %s1045_s23, 4  ;;  %s32_s22 = int_to_ptr.vmem [resolvable:$true] %s31_s22  ;;  %s22_s24 = int_to_ptr.vmem [resolvable:$true] %s21_s24 }
   0x4   :  { %s966_s25 = scalar_lea.vmem %s32_s22, 128  ;;  %p971_p1 = scmp.lt.s32.totalorder %s32_s22, %s32_s22 }
   0x5   :  { %p967_p0 = scmp.ne.s32.totalorder %s32_s22, %s966_s25  ;;  %p972_p2 = scmp.lt.s32.totalorder %s966_s25, %s966_s25 }
   0x7   :  { %p973_p3 = por %p972_p2, %p971_p1 }
   0x9   :  { %p974_p4 = pnand %p973_p3, %p967_p0 }
   0xb   :  { %977 = shalt.err (!%p974_p4)
}
   0xc   :  { %34 = dma.hbm_to_vmem [thread:$0]  %s1118_s1, 128, %s32_s22, [#allocation6]  }
   0xd   :  { %s986_s28 = scalar_lea.vmem %s22_s24, 128  ;;  %p991_p6 = scmp.lt.s32.totalorder %s22_s24, %s22_s24 }
   0xe   :  { %p987_p5 = scmp.ne.s32.totalorder %s22_s24, %s986_s28  ;;  %p992_p7 = scmp.lt.s32.totalorder %s986_s28, %s986_s28 }
  0x10   :  { %p993_p8 = por %p992_p7, %p991_p6 }
  0x12   :  { %p994_p9 = pnand %p993_p8, %p987_p5 }
  0x14   :  { %997 = shalt.err (!%p994_p9)
}
  0x15   :  { %24 = dma.hbm_to_vmem [thread:$0]  %s1117_s0, 128, %s22_s24, [#allocation4]  }
  0x16   :  { %s1046_s7 = smov [#allocation7]  }
  0x17   :  { %s40_s8 = sshll.u32 %s1046_s7, 4  ;;  %s41_s8 = int_to_ptr.vmem [resolvable:$true] %s40_s8 }
  0x18   :  { %s1006_s9 = scalar_lea.vmem %s41_s8, 1024  ;;  %p1011_p11 = scmp.lt.s32.totalorder %s41_s8, %s41_s8 }
  0x19   :  { %p1007_p10 = scmp.ne.s32.totalorder %s41_s8, %s1006_s9  ;;  %p1012_p12 = scmp.lt.s32.totalorder %s1006_s9, %s1006_s9 }
  0x1b   :  { %p1013_p13 = por %p1012_p12, %p1011_p11 }
  0x1d   :  { %p1014_p0 = pnand %p1013_p13, %p1007_p10 }
  0x1f   :  { %1017 = shalt.err (!%p1014_p0)
}
  0x20   :  { %s1047_s1 = smov 128   ;;  %s1048_s10 = smov 8  }
  0x21   :  { %46 = dma.hbm_to_vmem [thread:$0]  %s1119_s2, 1024, %s41_s8, [#allocation6], %s1047_s1, %s1047_s1, %s1048_s10  }
  0x22   :  { %s1049_s13 = smov [#allocation8]  }
  0x23   :  { %s52_s14 = sshll.u32 %s1049_s13, 4  ;;  %s53_s14 = int_to_ptr.vmem [resolvable:$true] %s52_s14 }
  0x24   :  { %s1026_s0 = scalar_lea.vmem %s53_s14, 8192  ;;  %p1031_p2 = scmp.lt.s32.totalorder %s53_s14, %s53_s14 }
  0x25   :  { %p1027_p1 = scmp.ne.s32.totalorder %s53_s14, %s1026_s0  ;;  %p1032_p3 = scmp.lt.s32.totalorder %s1026_s0, %s1026_s0 }
  0x27   :  { %p1033_p4 = por %p1032_p3, %p1031_p2 }
  0x29   :  { %p1034_p5 = pnand %p1033_p4, %p1027_p1 }
  0x2b   :  { %1037 = shalt.err (!%p1034_p5)
}
  0x2c   :  { %58 = dma.hbm_to_vmem [thread:$0]  %s1120_s3, 8192, %s53_s14, [#allocation9], %s1047_s1, %s1047_s1, %s1048_s10  }
  0x2d   :  { %1038 = dma.done.wait [#allocation4], 128  }
  0x2e   :  { %1039 = vsyncadd [#allocation4], 4294967168 }
  0x2f   :  { %1040 = dma.done.wait [#allocation6], 1152  }
  0x30   :  { %1041 = vsyncadd [#allocation6], 4294966144 }
  0x31   :  { %1042 = dma.done.wait [#allocation9], 8192  }
  0x32   :  { %1043 = vsyncadd [#allocation9], 4294959104  ;;  %v1050_v0 = vmov 0   ;;  %vm75_vm0 = vcmask 195584   ;;  %v77_v1 = vld [vmem:[#allocation5] sm:$0xff]  ;;  %v74_v2 = vld [vmem:[#allocation3] sm:$0xff] }
  0x33   :  { %146 = vmatprep.mubr.bf16.mxu1 %v1050_v0  ;;  %479 = vmatprep.mubr.bf16.mxu0 %v1050_v0  ;;  %s1051_s2 = smov 24   ;;  %76 = vst.msk [vmem:[#allocation2] sm:$0xff] %vm75_vm0, %v74_v2  ;;  %v850_v3 = vld [vmem:[#allocation7 + $0x14] ss:$8 sps:$4 sm:$0xff]   ;;  %v854_v5 = vld [vmem:[#allocation7 + $0x10] ss:$8 sps:$4 sm:$0xff]  }
  0x34   :  { %79 = vrot.lane.b32.xlu0 %v77_v1, %s1051_s2  ;;  %v852_v4 = vld [vmem:[#allocation7 + $0x34] ss:$8 sps:$4 sm:$0xff]   ;;  %126 = vmatprep.subr.bf16.mxu1 %v850_v3  ;;  %v855_v6 = vld [vmem:[#allocation7 + $0x30] ss:$8 sps:$4 sm:$0xff]   ;;  %v856_v7 = vld [vmem:[#allocation7 + $0x4] ss:$8 sps:$4 sm:$0xff]  }
  0x35   :  { %459 = vmatprep.subr.bf16.mxu0 %v852_v4  ;;  %127 = vmatpush1.bf16.msra.mxu1 %v854_v5  ;;  %v858_v8 = vld [vmem:[#allocation7 + $0x24] ss:$8 sps:$4 sm:$0xff]   ;;  %v860_v9 = vld [vmem:[#allocation7] ss:$8 sps:$4 sm:$0xff]   ;;  %v864_v11 = vld [vmem:[#allocation8 + $0x74] ss:$8 sps:$4 sm:$0xff]  }
  0x36   :  { %460 = vmatpush1.bf16.msra.mxu0 %v855_v6  ;;  %v861_v10 = vld [vmem:[#allocation7 + $0x20] ss:$8 sps:$4 sm:$0xff]   ;;  %128 = vmatprep.subr.bf16.mxu1 %v856_v7  ;;  %v867_v12 = vld [vmem:[#allocation8 + $0x174] ss:$8 sps:$4 sm:$0xff]   ;;  %vm82_vm1 = vcmask 261312   ;;  %vm110_vm2 = vcmask 261120  }
  0x37   :  { %461 = vmatprep.subr.bf16.mxu0 %v858_v8  ;;  %v862_v15 = vld [vmem:[#allocation8 + $0x70] ss:$8 sps:$4 sm:$0xff]   ;;  %v870_v18 = vld [vmem:[#allocation8 + $0x64] ss:$8 sps:$4 sm:$0xff]   ;;  %v868_v20 = vld [vmem:[#allocation8 + $0x60] ss:$8 sps:$4 sm:$0xff]  }
  0x38   :  { %v865_v16 = vld [vmem:[#allocation8 + $0x170] ss:$8 sps:$4 sm:$0xff]   ;;  %v873_v19 = vld [vmem:[#allocation8 + $0x164] ss:$8 sps:$4 sm:$0xff]   ;;  %v871_v21 = vld [vmem:[#allocation8 + $0x160] ss:$8 sps:$4 sm:$0xff]  }
  0x39   :  { %129 = vmatpush1.bf16.msra.mxu1 %v860_v9  ;;  %v876_v22 = vld [vmem:[#allocation8 + $0x54] ss:$8 sps:$4 sm:$0xff]   ;;  %v874_v24 = vld [vmem:[#allocation8 + $0x50] ss:$8 sps:$4 sm:$0xff]   ;;  %v882_v26 = vld [vmem:[#allocation8 + $0x44] ss:$8 sps:$4 sm:$0xff]  }
  0x3a   :  { %462 = vmatpush1.bf16.msra.mxu0 %v861_v10  ;;  %351 = vmatprep.subr.bf16.mxu1 %v864_v11  ;;  %v879_v23 = vld [vmem:[#allocation8 + $0x154] ss:$8 sps:$4 sm:$0xff]   ;;  %v877_v25 = vld [vmem:[#allocation8 + $0x150] ss:$8 sps:$4 sm:$0xff]   ;;  %v885_v27 = vld [vmem:[#allocation8 + $0x144] ss:$8 sps:$4 sm:$0xff]  }
  0x3b   :  { %685 = vmatprep.subr.bf16.mxu0 %v867_v12  ;;  %v880_v28 = vld [vmem:[#allocation8 + $0x40] ss:$8 sps:$4 sm:$0xff]   ;;  %v888_v30 = vld [vmem:[#allocation8 + $0x34] ss:$8 sps:$4 sm:$0xff]   ;;  %v886_v32 = vld [vmem:[#allocation8 + $0x30] ss:$8 sps:$4 sm:$0xff]  }
  0x3c   :  { %v883_v29 = vld [vmem:[#allocation8 + $0x140] ss:$8 sps:$4 sm:$0xff]   ;;  %v891_v31 = vld [vmem:[#allocation8 + $0x134] ss:$8 sps:$4 sm:$0xff]   ;;  %v889_v33 = vld [vmem:[#allocation8 + $0x130] ss:$8 sps:$4 sm:$0xff]  }
  0x3d   :  { %v894_v34 = vld [vmem:[#allocation8 + $0x24] ss:$8 sps:$4 sm:$0xff]   ;;  %v892_v36 = vld [vmem:[#allocation8 + $0x20] ss:$8 sps:$4 sm:$0xff]   ;;  %v900_v38 = vld [vmem:[#allocation8 + $0x14] ss:$8 sps:$4 sm:$0xff]  }
  0x3e   :  { %v897_v35 = vld [vmem:[#allocation8 + $0x124] ss:$8 sps:$4 sm:$0xff]   ;;  %v895_v37 = vld [vmem:[#allocation8 + $0x120] ss:$8 sps:$4 sm:$0xff]   ;;  %v903_v39 = vld [vmem:[#allocation8 + $0x114] ss:$8 sps:$4 sm:$0xff]  }
  0x3f   :  { %v898_v40 = vld [vmem:[#allocation8 + $0x10] ss:$8 sps:$4 sm:$0xff]   ;;  %v906_v42 = vld [vmem:[#allocation8 + $0x4] ss:$8 sps:$4 sm:$0xff]   ;;  %v904_v44 = vld [vmem:[#allocation8] ss:$8 sps:$4 sm:$0xff]  }
  0x40   :  { %v901_v41 = vld [vmem:[#allocation8 + $0x110] ss:$8 sps:$4 sm:$0xff]   ;;  %v909_v43 = vld [vmem:[#allocation8 + $0x104] ss:$8 sps:$4 sm:$0xff]   ;;  %v907_v45 = vld [vmem:[#allocation8 + $0x100] ss:$8 sps:$4 sm:$0xff]  }
  0x41   :  { %v912_v46 = vld [vmem:[#allocation8 + $0xf4] ss:$8 sps:$4 sm:$0xff]   ;;  %v910_v48 = vld [vmem:[#allocation8 + $0xf0] ss:$8 sps:$4 sm:$0xff]   ;;  %v918_v50 = vld [vmem:[#allocation8 + $0xe4] ss:$8 sps:$4 sm:$0xff]  }
  0x42   :  { %v915_v47 = vld [vmem:[#allocation8 + $0x1f4] ss:$8 sps:$4 sm:$0xff]   ;;  %v913_v49 = vld [vmem:[#allocation8 + $0x1f0] ss:$8 sps:$4 sm:$0xff]   ;;  %v921_v51 = vld [vmem:[#allocation8 + $0x1e4] ss:$8 sps:$4 sm:$0xff]  }
  0x43   :  { %v916_v52 = vld [vmem:[#allocation8 + $0xe0] ss:$8 sps:$4 sm:$0xff]   ;;  %v924_v54 = vld [vmem:[#allocation8 + $0xd4] ss:$8 sps:$4 sm:$0xff]   ;;  %v922_v56 = vld [vmem:[#allocation8 + $0xd0] ss:$8 sps:$4 sm:$0xff]  }
  0x44   :  { %v919_v53 = vld [vmem:[#allocation8 + $0x1e0] ss:$8 sps:$4 sm:$0xff]   ;;  %v927_v55 = vld [vmem:[#allocation8 + $0x1d4] ss:$8 sps:$4 sm:$0xff]   ;;  %v925_v57 = vld [vmem:[#allocation8 + $0x1d0] ss:$8 sps:$4 sm:$0xff]  }
  0x45   :  { %v930_v58 = vld [vmem:[#allocation8 + $0xc4] ss:$8 sps:$4 sm:$0xff]   ;;  %v928_v60 = vld [vmem:[#allocation8 + $0xc0] ss:$8 sps:$4 sm:$0xff]   ;;  %v936_v62 = vld [vmem:[#allocation8 + $0xb4] ss:$8 sps:$4 sm:$0xff]  }
  0x46   :  { %v933_v59 = vld [vmem:[#allocation8 + $0x1c4] ss:$8 sps:$4 sm:$0xff]   ;;  %v931_v61 = vld [vmem:[#allocation8 + $0x1c0] ss:$8 sps:$4 sm:$0xff]   ;;  %v939_v63 = vld [vmem:[#allocation8 + $0x1b4] ss:$8 sps:$4 sm:$0xff]  }
  0x47   :  { %v934_v1 = vld [vmem:[#allocation8 + $0xb0] ss:$8 sps:$4 sm:$0xff]   ;;  %v942_v3 = vld [vmem:[#allocation8 + $0xa4] ss:$8 sps:$4 sm:$0xff]   ;;  %v940_v5 = vld [vmem:[#allocation8 + $0xa0] ss:$8 sps:$4 sm:$0xff]  }
  0x48   :  { %v937_v2 = vld [vmem:[#allocation8 + $0x1b0] ss:$8 sps:$4 sm:$0xff]   ;;  %v945_v4 = vld [vmem:[#allocation8 + $0x1a4] ss:$8 sps:$4 sm:$0xff]   ;;  %v943_v6 = vld [vmem:[#allocation8 + $0x1a0] ss:$8 sps:$4 sm:$0xff]  }
  0x49   :  { %v948_v7 = vld [vmem:[#allocation8 + $0x94] ss:$8 sps:$4 sm:$0xff]   ;;  %v946_v9 = vld [vmem:[#allocation8 + $0x90] ss:$8 sps:$4 sm:$0xff]   ;;  %v954_v11 = vld [vmem:[#allocation8 + $0x84] ss:$8 sps:$4 sm:$0xff]  }
  0x4a   :  { %v951_v8 = vld [vmem:[#allocation8 + $0x194] ss:$8 sps:$4 sm:$0xff]   ;;  %v949_v10 = vld [vmem:[#allocation8 + $0x190] ss:$8 sps:$4 sm:$0xff]   ;;  %v957_v12 = vld [vmem:[#allocation8 + $0x184] ss:$8 sps:$4 sm:$0xff]  }
  0x4b   :  { %vm420_vm3 = vcmask 7168  }
  0xa6   :  { %v80_v13 = vpop.permute.xlu0 %79 }
  0xa7   :  { %83 = vst.msk [vmem:[#allocation2] sm:$0xff] %vm82_vm1, %v80_v13  ;;  %v952_v13 = vld [vmem:[#allocation8 + $0x80] ss:$8 sps:$4 sm:$0xff]  }
  0xae   :  { %v84_v14 = vld [vmem:[#allocation2] sm:$0xff] }
  0xaf   :  { %v85_v17 = vpack.c.bf16 %v84_v14, %v84_v14  ;;  %v955_v14 = vld [vmem:[#allocation8 + $0x180] ss:$8 sps:$4 sm:$0xff]  }
  0xb1   :  { %771 = vmatmul.mubr.msk.bf16.vlgmr.msra.gmra.mxu1 %vm110_vm2, %v85_v17  ;;  %808 = vmatmul.mubr.msk.bf16.vlgmr.msra.gmra.mxu0 %vm110_vm2, %v85_v17 }
  0xb2   :  { %352 = vmatpush1.bf16.msra.mxu1 %v862_v15  ;;  %686 = vmatpush1.bf16.msra.mxu0 %v865_v16 }
  0xb3   :  { %353 = vmatprep.subr.bf16.mxu1 %v870_v18  ;;  %687 = vmatprep.subr.bf16.mxu0 %v873_v19 }
  0xb6   :  { %354 = vmatpush1.bf16.msra.mxu1 %v868_v20  ;;  %688 = vmatpush1.bf16.msra.mxu0 %v871_v21 }
  0xb7   :  { %355 = vmatprep.subr.bf16.mxu1 %v876_v22  ;;  %689 = vmatprep.subr.bf16.mxu0 %v879_v23 }
  0xba   :  { %356 = vmatpush1.bf16.msra.mxu1 %v874_v24  ;;  %690 = vmatpush1.bf16.msra.mxu0 %v877_v25 }
  0xbb   :  { %357 = vmatprep.subr.bf16.mxu1 %v882_v26  ;;  %691 = vmatprep.subr.bf16.mxu0 %v885_v27 }
  0xbe   :  { %358 = vmatpush1.bf16.msra.mxu1 %v880_v28  ;;  %692 = vmatpush1.bf16.msra.mxu0 %v883_v29 }
  0xbf   :  { %359 = vmatprep.subr.bf16.mxu1 %v888_v30  ;;  %693 = vmatprep.subr.bf16.mxu0 %v891_v31  ;;  %v397_v31 = vlaneseq }
  0xc2   :  { %360 = vmatpush1.bf16.msra.mxu1 %v886_v32  ;;  %694 = vmatpush1.bf16.msra.mxu0 %v889_v33  ;;  %v398_v32 = vshrl.u32 %v397_v31, 7  ;;  %v394_v33 = vld [vmem:[%s1121_s4] sm:$0x3] }
  0xc3   :  { %361 = vmatprep.subr.bf16.mxu1 %v894_v34  ;;  %695 = vmatprep.subr.bf16.mxu0 %v897_v35  ;;  %v841_v34 = vld [vmem:[%s1121_s4 + $0x2] sm:$0x3]  ;;  %v395_v35 = vunpack.c.l.bf16 %v394_v33 }
  0xc6   :  { %362 = vmatpush1.bf16.msra.mxu1 %v892_v36  ;;  %696 = vmatpush1.bf16.msra.mxu0 %v895_v37  ;;  %v399_v36 = vsub.s32 0, %v398_v32  ;;  %v730_v37 = vunpack.c.l.bf16 %v841_v34 }
  0xc7   :  { %363 = vmatprep.subr.bf16.mxu1 %v900_v38  ;;  %697 = vmatprep.subr.bf16.mxu0 %v903_v39 }
  0xc8   :  { %v400_v38 = vrot.slane %v395_v35, %v399_v36  ;;  %v735_v39 = vrot.slane %v730_v37, %v399_v36 }
  0xca   :  { %364 = vmatpush1.bf16.msra.mxu1 %v898_v40  ;;  %698 = vmatpush1.bf16.msra.mxu0 %v901_v41 }
  0xcb   :  { %365 = vmatprep.subr.bf16.mxu1 %v906_v42  ;;  %699 = vmatprep.subr.bf16.mxu0 %v909_v43  ;;  %v410_v43 = vrot.slane %v400_v38, %v399_v36 }
  0xce   :  { %366 = vmatpush1.bf16.msra.mxu1 %v904_v44  ;;  %700 = vmatpush1.bf16.msra.mxu0 %v907_v45  ;;  %v745_v45 = vrot.slane %v735_v39, %v399_v36 }
  0xcf   :  { %367 = vmatprep.subr.bf16.mxu1 %v912_v46  ;;  %701 = vmatprep.subr.bf16.mxu0 %v915_v47 }
  0xd2   :  { %368 = vmatpush2.bf16.msra.mxu1 %v910_v48  ;;  %702 = vmatpush2.bf16.msra.mxu0 %v913_v49 }
  0xd3   :  { %369 = vmatprep.subr.bf16.mxu1 %v918_v50  ;;  %703 = vmatprep.subr.bf16.mxu0 %v921_v51 }
  0xd6   :  { %370 = vmatpush2.bf16.msra.mxu1 %v916_v52  ;;  %704 = vmatpush2.bf16.msra.mxu0 %v919_v53 }
  0xd7   :  { %371 = vmatprep.subr.bf16.mxu1 %v924_v54  ;;  %705 = vmatprep.subr.bf16.mxu0 %v927_v55 }
  0xda   :  { %372 = vmatpush2.bf16.msra.mxu1 %v922_v56  ;;  %706 = vmatpush2.bf16.msra.mxu0 %v925_v57 }
  0xdb   :  { %373 = vmatprep.subr.bf16.mxu1 %v930_v58  ;;  %707 = vmatprep.subr.bf16.mxu0 %v933_v59 }
  0xde   :  { %374 = vmatpush2.bf16.msra.mxu1 %v928_v60  ;;  %708 = vmatpush2.bf16.msra.mxu0 %v931_v61 }
  0xdf   :  { %375 = vmatprep.subr.bf16.mxu1 %v936_v62  ;;  %709 = vmatprep.subr.bf16.mxu0 %v939_v63 }
  0xe2   :  { %376 = vmatpush2.bf16.msra.mxu1 %v934_v1  ;;  %710 = vmatpush2.bf16.msra.mxu0 %v937_v2 }
  0xe3   :  { %377 = vmatprep.subr.bf16.mxu1 %v942_v3  ;;  %711 = vmatprep.subr.bf16.mxu0 %v945_v4 }
  0xe6   :  { %378 = vmatpush2.bf16.msra.mxu1 %v940_v5  ;;  %712 = vmatpush2.bf16.msra.mxu0 %v943_v6 }
  0xe7   :  { %379 = vmatprep.subr.bf16.mxu1 %v948_v7  ;;  %713 = vmatprep.subr.bf16.mxu0 %v951_v8 }
  0xea   :  { %380 = vmatpush2.bf16.msra.mxu1 %v946_v9  ;;  %714 = vmatpush2.bf16.msra.mxu0 %v949_v10 }
  0xeb   :  { %381 = vmatprep.subr.bf16.mxu1 %v954_v11  ;;  %715 = vmatprep.subr.bf16.mxu0 %v957_v12 }
  0xee   :  { %382 = vmatpush2.bf16.msra.mxu1 %v952_v13  ;;  %716 = vmatpush2.bf16.msra.mxu0 %v955_v14 }
 0x171   :  { %v148_v15 = vpop.f32.mrf.mxu1  ;;  %v481_v16 = vpop.f32.mrf.mxu0 }
 0x172   :  { %v155_v17 = vpack.c.bf16 %v148_v15, %v148_v15  ;;  %v488_v18 = vpack.c.bf16 %v481_v16, %v481_v16 }
 0x173   :  { %v150_v19 = vpop.f32.mrf.mxu1  ;;  %v483_v20 = vpop.f32.mrf.mxu0 }
 0x174   :  { %v156_v21 = vpack.c.bf16 %v150_v19, %v150_v19  ;;  %v489_v22 = vpack.c.bf16 %v483_v20, %v483_v20  ;;  %v157_v27 = vmax.bf16 %v1050_v0, %v155_v17  ;;  %v490_v28 = vmax.bf16 %v1050_v0, %v488_v18 }
 0x175   :  { %v152_v23 = vpop.f32.mrf.mxu1  ;;  %v485_v24 = vpop.f32.mrf.mxu0 }
 0x176   :  { %v158_v25 = vmax.bf16 %v1050_v0, %v156_v21  ;;  %v491_v26 = vmax.bf16 %v1050_v0, %v489_v22  ;;  %v403_v0 = vsub.s32 2, %v398_v32 }
 0x177   :  { %v153_v29 = vpop.f32.mrf.mxu1  ;;  %v486_v30 = vpop.f32.mrf.mxu0 }
 0x178   :  { %383 = vmatprep.mubr.bf16.mxu1 %v158_v25  ;;  %717 = vmatprep.mubr.bf16.mxu0 %v491_v26  ;;  %v404_v40 = vrot.slane %v395_v35, %v403_v0  ;;  %v739_v41 = vrot.slane %v730_v37, %v403_v0 }
 0x179   :  { %384 = vmatmul.mubr.bf16.vlgmr.msra.gmra.mxu1 %v157_v27  ;;  %718 = vmatmul.mubr.bf16.vlgmr.msra.gmra.mxu0 %v490_v28 }
 0x17a   :  { %v414_v48 = vrot.slane %v404_v40, %v399_v36  ;;  %v749_v49 = vrot.slane %v739_v41, %v399_v36 }
 0x239   :  { %v385_v42 = vpop.f32.mrf.mxu1  ;;  %v719_v44 = vpop.f32.mrf.mxu0 }
 0x23a   :  { %v392_v46 = vmax.f32 %v385_v42, 0.0  ;;  %v726_v47 = vmax.f32 %v719_v44, 0.0 }
 0x23b   :  { %v387_v50 = vpop.f32.mrf.mxu1  ;;  %v721_v51 = vpop.f32.mrf.mxu0 }
 0x23c   :  { %v393_v52 = vmax.f32 %v387_v50, 0.0  ;;  %v727_v53 = vmax.f32 %v721_v51, 0.0  ;;  %v415_v56 = vmul.f32 %v410_v43, %v392_v46  ;;  %v750_v58 = vmul.f32 %v745_v45, %v726_v47 }
 0x23d   :  { %v389_v54 = vpop.f32.mrf.mxu1  ;;  %v723_v55 = vpop.f32.mrf.mxu0 }
 0x23e   :  { %v416_v57 = vmul.f32 %v414_v48, %v393_v52  ;;  %v751_v59 = vmul.f32 %v749_v49, %v727_v53 }
 0x23f   :  { %v390_v60 = vpop.f32.mrf.mxu1  ;;  %v724_v61 = vpop.f32.mrf.mxu0 }
 0x240   :  { %v752_v62 = vadd.f32 %v751_v59, %v750_v58  ;;  %v417_v63 = vadd.f32 %v416_v57, %v415_v56 }
 0x242   :  { %753 = vadd.xlane.f32.xlu1 %v752_v62  ;;  %418 = vadd.xlane.f32.xlu0 %v417_v63 }
 0x2cb   :  { %v754_v1 = vpop.xlane.xlu1 %753  ;;  %v419_v2 = vpop.xlane.xlu0 %418 }
 0x2cc   :  { %755 = vst.msk [vmem:[%s1123_s6] sm:$0xff] %vm420_vm3, %v754_v1  ;;  %421 = vst.msk [vmem:[%s1122_s5] sm:$0xff] %vm420_vm3, %v419_v2 }
 0x2cd   :  { %764 = vsyncpa [#allocation4], 1 }
 0x2ce   :  { %765 = vsyncpa [#allocation6], 1 }
 0x2cf   :  { %766 = vsyncpa [#allocation9], 1 }

</bundles_post_ra>
